<compile_context>
chip_gen: v6e
topology: v6e:2x2x1
jax: 0.10.0
libtpu: 0.0.40
codegen_flags: <defaults>
</compile_context>

<pallas_src>
import jax
import jax.numpy as jnp
from jax import lax
from jax.experimental import pallas as pl
from jax.experimental.pallas import tpu as pltpu

EPS = 1e-5
NEG_SLOPE = 0.01


def home_t_kernel(x_ref, w1_ref, w2_ref, w3_ref, w4_ref, vec_ref, out_ref, xs_ref):
    B = x_ref.shape[0]
    in_size = x_ref.shape[1]
    inv_b = 1.0 / B

    def bn_lrelu(y, gs, q, beta):
        # Training-mode BatchNorm1d (batch mean, biased batch var) + LeakyReLU,
        # with the int8 per-channel dequant scale s folded in:
        #   y_true = y * s;  SCALE = (gamma*s) * rsqrt(var(y)*s^2 + eps)
        #   yhat   = y * SCALE + (beta - mean(y)*SCALE)
        mean = jnp.sum(y, axis=0, keepdims=True) * inv_b
        msq = jnp.sum(y * y, axis=0, keepdims=True) * inv_b
        var = msq - mean * mean                     # biased batch variance of raw y
        scale = gs * lax.rsqrt(var * q + EPS)       # gs = gamma*s, q = s*s
        shift = beta - mean * scale
        yhat = y * scale + shift
        return jnp.maximum(yhat, NEG_SLOPE * yhat)  # LeakyReLU (slope < 1)

    # In-kernel pad (244 -> 256) + f32 -> bf16 cast of x (no wrapper-side pass).
    xs_ref[...] = jnp.zeros_like(xs_ref)            # padded lanes must be exact 0
    xs_ref[:, :in_size] = x_ref[...].astype(jnp.bfloat16)
    x = xs_ref[...]                                 # bf16 [B, 256]

    # Packed per-feature vectors, sliced directly from the ref.
    gs1, q1, be1 = vec_ref[0:1, :], vec_ref[1:2, :], vec_ref[2:3, :]
    gs2, q2 = vec_ref[3:4, 0:256], vec_ref[3:4, 256:512]
    be2, gs3, q3 = vec_ref[4:5, 0:256], vec_ref[4:5, 256:384], vec_ref[4:5, 384:512]
    be3, s4, b4 = vec_ref[5:6, 0:128], vec_ref[5:6, 128:256], vec_ref[5:6, 256:384]

    # lay1: Linear(244->512) [bias cancelled by batch-stat BN] + BN + LeakyReLU
    y1 = jnp.dot(x, w1_ref[...].astype(jnp.bfloat16),
                 preferred_element_type=jnp.float32)
    y1 = bn_lrelu(y1, gs1, q1, be1).astype(jnp.bfloat16)

    # lay2: Linear(512->256) + BN + LeakyReLU
    y2 = jnp.dot(y1, w2_ref[...].astype(jnp.bfloat16),
                 preferred_element_type=jnp.float32)
    y2 = bn_lrelu(y2, gs2, q2, be2).astype(jnp.bfloat16)

    # lay3: Linear(256->128) + BN + LeakyReLU
    y3 = jnp.dot(y2, w3_ref[...].astype(jnp.bfloat16),
                 preferred_element_type=jnp.float32)
    y3 = bn_lrelu(y3, gs3, q3, be3).astype(jnp.bfloat16)

    # lay4: Linear(128->2), zero-padded to 128 output lanes (lane-dense store);
    # dequant scale + bias applied on the f32 accumulator.
    y4 = jnp.dot(y3, w4_ref[...].astype(jnp.bfloat16),
                 preferred_element_type=jnp.float32)
    out_ref[...] = y4 * s4 + b4


def build_params(key, in_size):
    """PyTorch-layout parameters: Linear weight [out, in], bias [out].
    BN gamma/beta randomized (instead of 1/0 init) to exercise the affine path."""
    dims = [(in_size, 512), (512, 256), (256, 128), (128, 2)]
    keys = jax.random.split(key, 4 * len(dims))
    p = {}
    ki = 0
    for li, (din, dout) in enumerate(dims, start=1):
        bound = 1.0 / jnp.sqrt(float(din))
        p[f"w{li}"] = jax.random.uniform(keys[ki], (dout, din), jnp.float32, -bound, bound); ki += 1
        p[f"b{li}"] = jax.random.uniform(keys[ki], (dout,), jnp.float32, -bound, bound); ki += 1
        if li < 4:
            p[f"g{li}"] = 1.0 + 0.2 * jax.random.normal(keys[ki], (dout,), jnp.float32); ki += 1
            p[f"be{li}"] = 0.1 * jax.random.normal(keys[ki], (dout,), jnp.float32); ki += 1
        else:
            ki += 2
    return p


def _quantize_per_out(w):
    """Symmetric per-output-channel int8 quantization of a [out, in] weight."""
    s = jnp.maximum(jnp.max(jnp.abs(w), axis=1) / 127.0, 1e-12)     # [out]
    wq = jnp.clip(jnp.round(w / s[:, None]), -127, 127).astype(jnp.int8)
    return wq, s


def prepare_kernel_params(p):
    """Kernel-side parameter layout:
       - weights int8, transposed to [in, out]; quantize THEN pad so padded
         regions are exactly zero (w1: K 244->256, w4: N 2->128)
       - b1/b2/b3 dropped (cancelled by training-mode BN)
       - gamma*s, s^2, beta (per BN layer) + s4, b4 packed into one [8,512] f32."""
    in_size = p["w1"].shape[1]
    k_pad = ((in_size + 127) // 128) * 128

    wq1, s1 = _quantize_per_out(p["w1"])      # [512, 244], [512]
    wq2, s2 = _quantize_per_out(p["w2"])      # [256, 512], [256]
    wq3, s3 = _quantize_per_out(p["w3"])      # [128, 256], [128]
    wq4, s4 = _quantize_per_out(p["w4"])      # [2, 128],   [2]

    w1 = jnp.zeros((k_pad, 512), jnp.int8).at[:in_size, :].set(wq1.T)
    w2 = wq2.T                                 # [512, 256]
    w3 = wq3.T                                 # [256, 128]
    w4 = jnp.zeros((128, 128), jnp.int8).at[:, :2].set(wq4.T)

    vec = jnp.zeros((8, 512), jnp.float32)
    vec = vec.at[0, :].set(p["g1"] * s1)                 # gs1  [512]
    vec = vec.at[1, :].set(s1 * s1)                      # q1   [512]
    vec = vec.at[2, :].set(p["be1"])                     # be1  [512]
    vec = vec.at[3, :256].set(p["g2"] * s2)              # gs2  [256]
    vec = vec.at[3, 256:].set(s2 * s2)                   # q2   [256]
    vec = vec.at[4, :256].set(p["be2"])                  # be2  [256]
    vec = vec.at[4, 256:384].set(p["g3"] * s3)           # gs3  [128]
    vec = vec.at[4, 384:].set(s3 * s3)                   # q3   [128]
    vec = vec.at[5, :128].set(p["be3"])                  # be3  [128]
    vec = vec.at[5, 128:130].set(s4)                     # s4   (rest stays 0)
    vec = vec.at[5, 256:258].set(p["b4"])                # b4   (rest stays 0)

    # Dequantized PyTorch-layout weights (for the exact-math reference check).
    deq = {**p,
           "w1": wq1.astype(jnp.float32) * s1[:, None],
           "w2": wq2.astype(jnp.float32) * s2[:, None],
           "w3": wq3.astype(jnp.float32) * s3[:, None],
           "w4": wq4.astype(jnp.float32) * s4[:, None]}

    return {"w1": w1, "w2": w2, "w3": w3, "w4": w4, "vec": vec,
            "in_size": in_size, "k_pad": k_pad, "deq": deq}


def home_t_forward(x, kp):
    """x: [B, in_size] float32.  Returns [B, 2] float32."""
    B, in_size = x.shape
    assert in_size == kp["in_size"]
    k_pad = kp["k_pad"]

    flops = 2 * B * (k_pad * 512 + 512 * 256 + 256 * 128 + 128 * 128)
    bytes_accessed = (kp["w1"].size + kp["w2"].size + kp["w3"].size + kp["w4"].size
                      + kp["vec"].size * 4 + x.size * 4 + B * 128 * 4)

    vmem = pl.BlockSpec(memory_space=pltpu.MemorySpace.VMEM)
    out = pl.pallas_call(
        home_t_kernel,
        out_shape=jax.ShapeDtypeStruct((B, 128), jnp.float32),
        in_specs=[vmem] * 6,
        out_specs=vmem,
        scratch_shapes=[pltpu.VMEM((B, k_pad), jnp.bfloat16)],
        cost_estimate=pl.CostEstimate(flops=flops,
                                      transcendentals=512 + 256 + 128,
                                      bytes_accessed=bytes_accessed),
    )(x, kp["w1"], kp["w2"], kp["w3"], kp["w4"], kp["vec"])
    return out[:, :2]


def reference_forward(x, p):
    """Pure-JAX mirror of the PyTorch forward (training-mode BatchNorm1d),
    including the Linear biases, with the same bf16-matmul / f32-accumulate
    numerics as the kernel."""
    def linear(a, w, b):
        y = jnp.dot(a.astype(jnp.bfloat16), w.T.astype(jnp.bfloat16),
                    preferred_element_type=jnp.float32)
        return y + b[None, :]

    def bn_lrelu(y, g, be):
        m = jnp.mean(y, axis=0, keepdims=True)
        v = jnp.mean((y - m) ** 2, axis=0, keepdims=True)
        yh = (y - m) / jnp.sqrt(v + EPS) * g[None, :] + be[None, :]
        return jnp.where(yh > 0, yh, NEG_SLOPE * yh)

    y = bn_lrelu(linear(x, p["w1"], p["b1"]), p["g1"], p["be1"])
    y = bn_lrelu(linear(y, p["w2"], p["b2"]), p["g2"], p["be2"])
    y = bn_lrelu(linear(y, p["w3"], p["b3"]), p["g3"], p["be3"])
    return linear(y, p["w4"], p["b4"])


if __name__ == "__main__":
    # addBur=False, addRest=False  ->  inSize = 244
    IN_SIZE = 244
    BATCH = 8   # BatchNorm1d training mode needs B > 1

    key = jax.random.PRNGKey(0)
    kx, kp_key = jax.random.split(key)
    x = jax.random.normal(kx, (BATCH, IN_SIZE), jnp.float32)

    params = build_params(kp_key, IN_SIZE)
    kparams = prepare_kernel_params(params)

    out = home_t_forward(x, kparams)
    out = jax.block_until_ready(out)
    assert out.shape == (BATCH, 2), out.shape

    # Exact-math check: kernel vs a pure-JAX PyTorch-style forward using the SAME
    # int8-dequantized weights (validates bias cancellation, folded BN affine,
    # dequant-scale folding, and the zero padding).
    ref_deq = reference_forward(x, kparams["deq"])
    assert jnp.allclose(out, ref_deq, atol=2e-2, rtol=2e-2), (out, ref_deq)

    # Fidelity sanity check vs the full-precision weights (difference is only the
    # per-channel int8 weight quantization error).
    ref_fp = reference_forward(x, params)
    assert jnp.allclose(out, ref_fp, atol=1e-1, rtol=1e-1), (out, ref_fp)

    print("KERNEL_OK")
</pallas_src>

<mosaic_0001>
module attributes {stable_mosaic.version = 11 : i64} {
  func.func @home_t_kernel(%arg0: memref<8x244xf32, #tpu.memory_space<vmem>>, %arg1: memref<256x512xi8, #tpu.memory_space<vmem>>, %arg2: memref<512x256xi8, #tpu.memory_space<vmem>>, %arg3: memref<256x128xi8, #tpu.memory_space<vmem>>, %arg4: memref<128x128xi8, #tpu.memory_space<vmem>>, %arg5: memref<8x512xf32, #tpu.memory_space<vmem>>, %arg6: memref<8x128xf32, #tpu.memory_space<vmem>>, %arg7: memref<8x256xbf16, #tpu.memory_space<vmem>>) attributes {dimension_semantics = [], scalar_prefetch = 0 : i64, scratch_operands = 1 : i64, tpu.core_type = #tpu.core_type<tc>} {
    %cst = arith.constant 0.000000e+00 : bf16
    %0 = vector.broadcast %cst : bf16 to vector<8x256xbf16>
    %c0 = arith.constant 0 : index
    %c0_0 = arith.constant 0 : index
    %1 = vector.load %arg7[%c0, %c0_0] : memref<8x256xbf16, #tpu.memory_space<vmem>>, vector<8x256xbf16>
    tpu.vector_store %arg7[%c0, %c0_0], %0 {strides = array<i32>} : memref<8x256xbf16, #tpu.memory_space<vmem>>, vector<8x256xbf16>,
    %c0_1 = arith.constant 0 : index
    %c0_2 = arith.constant 0 : index
    %2 = vector.load %arg0[%c0_1, %c0_2] : memref<8x244xf32, #tpu.memory_space<vmem>>, vector<8x244xf32>
    %3 = arith.truncf %2 : vector<8x244xf32> to vector<8x244xbf16>
    %c0_3 = arith.constant 0 : index
    %c0_4 = arith.constant 0 : index
    %4 = vector.load %arg7[%c0_3, %c0_4] : memref<8x256xbf16, #tpu.memory_space<vmem>>, vector<8x244xbf16>
    tpu.vector_store %arg7[%c0_3, %c0_4], %3 {strides = array<i32>} : memref<8x256xbf16, #tpu.memory_space<vmem>>, vector<8x244xbf16>,
    %c0_5 = arith.constant 0 : index
    %c0_6 = arith.constant 0 : index
    %5 = vector.load %arg7[%c0_5, %c0_6] : memref<8x256xbf16, #tpu.memory_space<vmem>>, vector<8x256xbf16>
    %c0_7 = arith.constant 0 : index
    %c0_8 = arith.constant 0 : index
    %6 = vector.load %arg5[%c0_7, %c0_8] : memref<8x512xf32, #tpu.memory_space<vmem>>, vector<1x512xf32>
    %c1 = arith.constant 1 : index
    %c0_9 = arith.constant 0 : index
    %7 = vector.load %arg5[%c1, %c0_9] : memref<8x512xf32, #tpu.memory_space<vmem>>, vector<1x512xf32>
    %c2 = arith.constant 2 : index
    %c0_10 = arith.constant 0 : index
    %8 = vector.load %arg5[%c2, %c0_10] : memref<8x512xf32, #tpu.memory_space<vmem>>, vector<1x512xf32>
    %c3 = arith.constant 3 : index
    %c0_11 = arith.constant 0 : index
    %9 = vector.load %arg5[%c3, %c0_11] : memref<8x512xf32, #tpu.memory_space<vmem>>, vector<1x256xf32>
    %c3_12 = arith.constant 3 : index
    %c256 = arith.constant 256 : index
    %10 = vector.load %arg5[%c3_12, %c256] : memref<8x512xf32, #tpu.memory_space<vmem>>, vector<1x256xf32>
    %c4 = arith.constant 4 : index
    %c0_13 = arith.constant 0 : index
    %11 = vector.load %arg5[%c4, %c0_13] : memref<8x512xf32, #tpu.memory_space<vmem>>, vector<1x256xf32>
    %c4_14 = arith.constant 4 : index
    %c256_15 = arith.constant 256 : index
    %12 = vector.load %arg5[%c4_14, %c256_15] : memref<8x512xf32, #tpu.memory_space<vmem>>, vector<1x128xf32>
    %c4_16 = arith.constant 4 : index
    %c384 = arith.constant 384 : index
    %13 = vector.load %arg5[%c4_16, %c384] : memref<8x512xf32, #tpu.memory_space<vmem>>, vector<1x128xf32>
    %c5 = arith.constant 5 : index
    %c0_17 = arith.constant 0 : index
    %14 = vector.load %arg5[%c5, %c0_17] : memref<8x512xf32, #tpu.memory_space<vmem>>, vector<1x128xf32>
    %c5_18 = arith.constant 5 : index
    %c128 = arith.constant 128 : index
    %15 = vector.load %arg5[%c5_18, %c128] : memref<8x512xf32, #tpu.memory_space<vmem>>, vector<1x128xf32>
    %c5_19 = arith.constant 5 : index
    %c256_20 = arith.constant 256 : index
    %16 = vector.load %arg5[%c5_19, %c256_20] : memref<8x512xf32, #tpu.memory_space<vmem>>, vector<1x128xf32>
    %c0_21 = arith.constant 0 : index
    %c0_22 = arith.constant 0 : index
    %17 = vector.load %arg1[%c0_21, %c0_22] : memref<256x512xi8, #tpu.memory_space<vmem>>, vector<256x512xi8>
    %18 = arith.sitofp %17 : vector<256x512xi8> to vector<256x512xbf16>
    %cst_23 = arith.constant dense<0.000000e+00> : vector<8x512xf32>
    %19 = tpu.matmul %5, %18, %cst_23 {dimension_numbers = #tpu.dot_dimension_numbers<[1], [0], [0], [1], [0, 0, 1, 1], [], []>} : vector<8x256xbf16>, vector<256x512xbf16>, vector<8x512xf32> -> vector<8x512xf32>
    %cst_24 = arith.constant dense<0.000000e+00> : vector<512xf32>
    %20 = vector.multi_reduction <add>, %19, %cst_24 [0] : vector<8x512xf32> to vector<512xf32>
    %21 = vector.shape_cast %20 : vector<512xf32> to vector<1x512xf32>
    %cst_25 = arith.constant 1.250000e-01 : f32
    %22 = vector.broadcast %cst_25 : f32 to vector<1x512xf32>
    %23 = arith.mulf %21, %22 : vector<1x512xf32>
    %24 = arith.mulf %19, %19 : vector<8x512xf32>
    %cst_26 = arith.constant dense<0.000000e+00> : vector<512xf32>
    %25 = vector.multi_reduction <add>, %24, %cst_26 [0] : vector<8x512xf32> to vector<512xf32>
    %26 = vector.shape_cast %25 : vector<512xf32> to vector<1x512xf32>
    %cst_27 = arith.constant 1.250000e-01 : f32
    %27 = vector.broadcast %cst_27 : f32 to vector<1x512xf32>
    %28 = arith.mulf %26, %27 : vector<1x512xf32>
    %29 = arith.mulf %23, %23 : vector<1x512xf32>
    %30 = arith.subf %28, %29 : vector<1x512xf32>
    %31 = arith.mulf %30, %7 : vector<1x512xf32>
    %cst_28 = arith.constant 9.99999974E-6 : f32
    %32 = vector.broadcast %cst_28 : f32 to vector<1x512xf32>
    %33 = arith.addf %31, %32 : vector<1x512xf32>
    %34 = math.rsqrt %33 : vector<1x512xf32>
    %35 = arith.mulf %6, %34 : vector<1x512xf32>
    %36 = arith.mulf %23, %35 : vector<1x512xf32>
    %37 = arith.subf %8, %36 : vector<1x512xf32>
    %38 = vector.broadcast %35 : vector<1x512xf32> to vector<8x512xf32>
    %39 = arith.mulf %19, %38 : vector<8x512xf32>
    %40 = vector.broadcast %37 : vector<1x512xf32> to vector<8x512xf32>
    %41 = arith.addf %39, %40 : vector<8x512xf32>
    %cst_29 = arith.constant 0.00999999977 : f32
    %42 = vector.broadcast %cst_29 : f32 to vector<8x512xf32>
    %43 = arith.mulf %42, %41 : vector<8x512xf32>
    %44 = arith.maximumf %41, %43 : vector<8x512xf32>
    %45 = arith.truncf %44 : vector<8x512xf32> to vector<8x512xbf16>
    %c0_30 = arith.constant 0 : index
    %c0_31 = arith.constant 0 : index
    %46 = vector.load %arg2[%c0_30, %c0_31] : memref<512x256xi8, #tpu.memory_space<vmem>>, vector<512x256xi8>
    %47 = arith.sitofp %46 : vector<512x256xi8> to vector<512x256xbf16>
    %cst_32 = arith.constant dense<0.000000e+00> : vector<8x256xf32>
    %48 = tpu.matmul %45, %47, %cst_32 {dimension_numbers = #tpu.dot_dimension_numbers<[1], [0], [0], [1], [0, 0, 1, 1], [], []>} : vector<8x512xbf16>, vector<512x256xbf16>, vector<8x256xf32> -> vector<8x256xf32>
    %cst_33 = arith.constant dense<0.000000e+00> : vector<256xf32>
    %49 = vector.multi_reduction <add>, %48, %cst_33 [0] : vector<8x256xf32> to vector<256xf32>
    %50 = vector.shape_cast %49 : vector<256xf32> to vector<1x256xf32>
    %cst_34 = arith.constant 1.250000e-01 : f32
    %51 = vector.broadcast %cst_34 : f32 to vector<1x256xf32>
    %52 = arith.mulf %50, %51 : vector<1x256xf32>
    %53 = arith.mulf %48, %48 : vector<8x256xf32>
    %cst_35 = arith.constant dense<0.000000e+00> : vector<256xf32>
    %54 = vector.multi_reduction <add>, %53, %cst_35 [0] : vector<8x256xf32> to vector<256xf32>
    %55 = vector.shape_cast %54 : vector<256xf32> to vector<1x256xf32>
    %cst_36 = arith.constant 1.250000e-01 : f32
    %56 = vector.broadcast %cst_36 : f32 to vector<1x256xf32>
    %57 = arith.mulf %55, %56 : vector<1x256xf32>
    %58 = arith.mulf %52, %52 : vector<1x256xf32>
    %59 = arith.subf %57, %58 : vector<1x256xf32>
    %60 = arith.mulf %59, %10 : vector<1x256xf32>
    %cst_37 = arith.constant 9.99999974E-6 : f32
    %61 = vector.broadcast %cst_37 : f32 to vector<1x256xf32>
    %62 = arith.addf %60, %61 : vector<1x256xf32>
    %63 = math.rsqrt %62 : vector<1x256xf32>
    %64 = arith.mulf %9, %63 : vector<1x256xf32>
    %65 = arith.mulf %52, %64 : vector<1x256xf32>
    %66 = arith.subf %11, %65 : vector<1x256xf32>
    %67 = vector.broadcast %64 : vector<1x256xf32> to vector<8x256xf32>
    %68 = arith.mulf %48, %67 : vector<8x256xf32>
    %69 = vector.broadcast %66 : vector<1x256xf32> to vector<8x256xf32>
    %70 = arith.addf %68, %69 : vector<8x256xf32>
    %cst_38 = arith.constant 0.00999999977 : f32
    %71 = vector.broadcast %cst_38 : f32 to vector<8x256xf32>
    %72 = arith.mulf %71, %70 : vector<8x256xf32>
    %73 = arith.maximumf %70, %72 : vector<8x256xf32>
    %74 = arith.truncf %73 : vector<8x256xf32> to vector<8x256xbf16>
    %c0_39 = arith.constant 0 : index
    %c0_40 = arith.constant 0 : index
    %75 = vector.load %arg3[%c0_39, %c0_40] : memref<256x128xi8, #tpu.memory_space<vmem>>, vector<256x128xi8>
    %76 = arith.sitofp %75 : vector<256x128xi8> to vector<256x128xbf16>
    %cst_41 = arith.constant dense<0.000000e+00> : vector<8x128xf32>
    %77 = tpu.matmul %74, %76, %cst_41 {dimension_numbers = #tpu.dot_dimension_numbers<[1], [0], [0], [1], [0, 0, 1, 1], [], []>} : vector<8x256xbf16>, vector<256x128xbf16>, vector<8x128xf32> -> vector<8x128xf32>
    %cst_42 = arith.constant dense<0.000000e+00> : vector<128xf32>
    %78 = vector.multi_reduction <add>, %77, %cst_42 [0] : vector<8x128xf32> to vector<128xf32>
    %79 = vector.shape_cast %78 : vector<128xf32> to vector<1x128xf32>
    %cst_43 = arith.constant 1.250000e-01 : f32
    %80 = vector.broadcast %cst_43 : f32 to vector<1x128xf32>
    %81 = arith.mulf %79, %80 : vector<1x128xf32>
    %82 = arith.mulf %77, %77 : vector<8x128xf32>
    %cst_44 = arith.constant dense<0.000000e+00> : vector<128xf32>
    %83 = vector.multi_reduction <add>, %82, %cst_44 [0] : vector<8x128xf32> to vector<128xf32>
    %84 = vector.shape_cast %83 : vector<128xf32> to vector<1x128xf32>
    %cst_45 = arith.constant 1.250000e-01 : f32
    %85 = vector.broadcast %cst_45 : f32 to vector<1x128xf32>
    %86 = arith.mulf %84, %85 : vector<1x128xf32>
    %87 = arith.mulf %81, %81 : vector<1x128xf32>
    %88 = arith.subf %86, %87 : vector<1x128xf32>
    %89 = arith.mulf %88, %13 : vector<1x128xf32>
    %cst_46 = arith.constant 9.99999974E-6 : f32
    %90 = vector.broadcast %cst_46 : f32 to vector<1x128xf32>
    %91 = arith.addf %89, %90 : vector<1x128xf32>
    %92 = math.rsqrt %91 : vector<1x128xf32>
    %93 = arith.mulf %12, %92 : vector<1x128xf32>
    %94 = arith.mulf %81, %93 : vector<1x128xf32>
    %95 = arith.subf %14, %94 : vector<1x128xf32>
    %96 = vector.broadcast %93 : vector<1x128xf32> to vector<8x128xf32>
    %97 = arith.mulf %77, %96 : vector<8x128xf32>
    %98 = vector.broadcast %95 : vector<1x128xf32> to vector<8x128xf32>
    %99 = arith.addf %97, %98 : vector<8x128xf32>
    %cst_47 = arith.constant 0.00999999977 : f32
    %100 = vector.broadcast %cst_47 : f32 to vector<8x128xf32>
    %101 = arith.mulf %100, %99 : vector<8x128xf32>
    %102 = arith.maximumf %99, %101 : vector<8x128xf32>
    %103 = arith.truncf %102 : vector<8x128xf32> to vector<8x128xbf16>
    %c0_48 = arith.constant 0 : index
    %c0_49 = arith.constant 0 : index
    %104 = vector.load %arg4[%c0_48, %c0_49] : memref<128x128xi8, #tpu.memory_space<vmem>>, vector<128x128xi8>
    %105 = arith.sitofp %104 : vector<128x128xi8> to vector<128x128xbf16>
    %cst_50 = arith.constant dense<0.000000e+00> : vector<8x128xf32>
    %106 = tpu.matmul %103, %105, %cst_50 {dimension_numbers = #tpu.dot_dimension_numbers<[1], [0], [0], [1], [0, 0, 1, 1], [], []>} : vector<8x128xbf16>, vector<128x128xbf16>, vector<8x128xf32> -> vector<8x128xf32>
    %107 = vector.broadcast %15 : vector<1x128xf32> to vector<8x128xf32>
    %108 = arith.mulf %106, %107 : vector<8x128xf32>
    %109 = vector.broadcast %16 : vector<1x128xf32> to vector<8x128xf32>
    %110 = arith.addf %108, %109 : vector<8x128xf32>
    %c0_51 = arith.constant 0 : index
    %c0_52 = arith.constant 0 : index
    %111 = vector.load %arg6[%c0_51, %c0_52] : memref<8x128xf32, #tpu.memory_space<vmem>>, vector<8x128xf32>
    tpu.vector_store %arg6[%c0_51, %c0_52], %110 {strides = array<i32>} : memref<8x128xf32, #tpu.memory_space<vmem>>, vector<8x128xf32>,
    return
  }
}

</mosaic_0001>

<bundles_post_ra>
// kernel: tpu_custom_call.1
= control target key start
LH: loop header
LB: loop body
LE: loop exit
PB: predicated region body
PF: predicated region fallthrough
CT: control target
= control target key end

     0   :  { %11 = vsyncpa [#allocation4], 0  ;;  %s1428_s0 = inlined_call_operand.hbm [shape: f32[8,244], index: 0, kind: input, shape index: {}]   ;;  %s1429_s1 = inlined_call_operand.hbm [shape: s8[256,512], index: 1, kind: input, shape index: {}]   ;;  %s1430_s2 = inlined_call_operand.hbm [shape: s8[512,256], index: 2, kind: input, shape index: {}]   ;;  %s1431_s3 = inlined_call_operand.hbm [shape: s8[256,128], index: 3, kind: input, shape index: {}]   ;;  %s1432_s4 = inlined_call_operand.hbm [shape: s8[128,128], index: 4, kind: input, shape index: {}]   ;;  %s1433_s5 = inlined_call_operand.hbm [shape: f32[8,512], index: 5, kind: input, shape index: {}]   ;;  %s1434_s6 = inlined_call_operand.hbm [shape: f32[8,128], index: 6, kind: output, shape index: {}]  }
   0x1   :  { %12 = vsyncpa [#allocation7], 0 }
   0x2   :  { %13 = vsyncpa [#allocation10], 0 }
   0x3   :  { %14 = vsyncpa [#allocation13], 0 }
   0x4   :  { %15 = vsyncpa [#allocation5], 0  ;;  %s1251_s21 = smov [#allocation6]  }
   0x5   :  { %s31_s22 = sshll.u32 %s1251_s21, 4  ;;  %s32_s22 = int_to_ptr.vmem [resolvable:$true] %s31_s22 }
   0x6   :  { %s1109_s23 = scalar_lea.vmem %s32_s22, 4096  ;;  %p1114_p1 = scmp.lt.s32.totalorder %s32_s22, %s32_s22 }
   0x7   :  { %p1110_p0 = scmp.ne.s32.totalorder %s32_s22, %s1109_s23  ;;  %p1115_p2 = scmp.lt.s32.totalorder %s1109_s23, %s1109_s23 }
   0x9   :  { %p1116_p3 = por %p1115_p2, %p1114_p1 }
   0xb   :  { %p1117_p4 = pnand %p1116_p3, %p1110_p0 }
   0xd   :  { %1120 = shalt.err (!%p1117_p4)
}
   0xe   :  { %s1252_s24 = smov 512   ;;  %s1253_s25 = smov 32  }
   0xf   :  { %37 = dma.hbm_to_vmem [thread:$0]  %s1429_s1, 4096, %s32_s22, [#allocation7], %s1252_s24, %s1252_s24, %s1253_s25  }
  0x10   :  { %s1254_s28 = smov [#allocation9]  }
  0x11   :  { %s55_s29 = sshll.u32 %s1254_s28, 4  ;;  %s56_s29 = int_to_ptr.vmem [resolvable:$true] %s55_s29 }
  0x12   :  { %s1129_s30 = scalar_lea.vmem %s56_s29, 1024  ;;  %p1134_p6 = scmp.lt.s32.totalorder %s56_s29, %s56_s29 }
  0x13   :  { %p1130_p5 = scmp.ne.s32.totalorder %s56_s29, %s1129_s30  ;;  %p1135_p7 = scmp.lt.s32.totalorder %s1129_s30, %s1129_s30 }
  0x15   :  { %p1136_p8 = por %p1135_p7, %p1134_p6 }
  0x17   :  { %p1137_p9 = pnand %p1136_p8, %p1130_p5 }
  0x19   :  { %1140 = shalt.err (!%p1137_p9)
}
  0x1a   :  { %s1255_s7 = smov 128   ;;  %s1256_s8 = smov 8  }
  0x1b   :  { %61 = dma.hbm_to_vmem [thread:$0]  %s1431_s3, 1024, %s56_s29, [#allocation10], %s1255_s7, %s1255_s7, %s1256_s8  }
  0x1c   :  { %s1257_s1 = smov [#allocation3]   ;;  %s1258_s12 = smov [#allocation8]  }
  0x1d   :  { %s22_s11 = sshll.u32 %s1257_s1, 4  ;;  %s43_s13 = sshll.u32 %s1258_s12, 4  ;;  %s23_s11 = int_to_ptr.vmem [resolvable:$true] %s22_s11  ;;  %s44_s13 = int_to_ptr.vmem [resolvable:$true] %s43_s13 }
  0x1e   :  { %s1149_s14 = scalar_lea.vmem %s23_s11, 256  ;;  %p1154_p11 = scmp.lt.s32.totalorder %s23_s11, %s23_s11 }
  0x1f   :  { %p1150_p10 = scmp.ne.s32.totalorder %s23_s11, %s1149_s14  ;;  %p1155_p12 = scmp.lt.s32.totalorder %s1149_s14, %s1149_s14 }
  0x21   :  { %p1156_p13 = por %p1155_p12, %p1154_p11 }
  0x23   :  { %p1157_p0 = pnand %p1156_p13, %p1150_p10 }
  0x25   :  { %1160 = shalt.err (!%p1157_p0)
}
  0x26   :  { %25 = dma.hbm_to_vmem [thread:$0]  %s1428_s0, 256, %s23_s11, [#allocation4]  }
  0x27   :  { %s1169_s17 = scalar_lea.vmem %s44_s13, 4096  ;;  %p1174_p2 = scmp.lt.s32.totalorder %s44_s13, %s44_s13 }
  0x28   :  { %p1170_p1 = scmp.ne.s32.totalorder %s44_s13, %s1169_s17  ;;  %p1175_p3 = scmp.lt.s32.totalorder %s1169_s17, %s1169_s17 }
  0x2a   :  { %p1176_p4 = por %p1175_p3, %p1174_p2 }
  0x2c   :  { %p1177_p5 = pnand %p1176_p4, %p1170_p1 }
  0x2e   :  { %1180 = shalt.err (!%p1177_p5)
}
  0x2f   :  { %s1259_s3 = smov 256   ;;  %s1260_s18 = smov 16  }
  0x30   :  { %49 = dma.hbm_to_vmem [thread:$0]  %s1430_s2, 4096, %s44_s13, [#allocation7], %s1259_s3, %s1259_s3, %s1260_s18  }
  0x31   :  { %s1261_s21 = smov [#allocation11]   ;;  %s1262_s23 = smov [#allocation12]  }
  0x32   :  { %s67_s22 = sshll.u32 %s1261_s21, 4  ;;  %s80_s24 = sshll.u32 %s1262_s23, 4  ;;  %s68_s22 = int_to_ptr.vmem [resolvable:$true] %s67_s22  ;;  %s81_s24 = int_to_ptr.vmem [resolvable:$true] %s80_s24 }
  0x33   :  { %s1189_s0 = scalar_lea.vmem %s68_s22, 512  ;;  %p1194_p7 = scmp.lt.s32.totalorder %s68_s22, %s68_s22 }
  0x34   :  { %p1190_p6 = scmp.ne.s32.totalorder %s68_s22, %s1189_s0  ;;  %p1195_p8 = scmp.lt.s32.totalorder %s1189_s0, %s1189_s0 }
  0x36   :  { %p1196_p9 = por %p1195_p8, %p1194_p7 }
  0x38   :  { %p1197_p10 = pnand %p1196_p9, %p1190_p6 }
  0x3a   :  { %1200 = shalt.err (!%p1197_p10)
}
  0x3b   :  { %73 = dma.hbm_to_vmem [thread:$0]  %s1432_s4, 512, %s68_s22, [#allocation10], %s1255_s7, %s1255_s7, %s1256_s8  }
  0x3c   :  { %s1209_s2 = scalar_lea.vmem %s81_s24, 512  ;;  %p1214_p12 = scmp.lt.s32.totalorder %s81_s24, %s81_s24 }
  0x3d   :  { %p1210_p11 = scmp.ne.s32.totalorder %s81_s24, %s1209_s2  ;;  %p1215_p13 = scmp.lt.s32.totalorder %s1209_s2, %s1209_s2 }
  0x3f   :  { %p1216_p0 = por %p1215_p13, %p1214_p12 }
  0x41   :  { %p1217_p1 = pnand %p1216_p0, %p1210_p11 }
  0x43   :  { %1220 = shalt.err (!%p1217_p1)
}
  0x44   :  { %83 = dma.hbm_to_vmem [thread:$0]  %s1433_s5, 512, %s81_s24, [#allocation13]  }
  0x45   :  { %1241 = dma.done.wait [#allocation4], 256  }
  0x46   :  { %1242 = vsyncadd [#allocation4], 4294967040 }
  0x47   :  { %1243 = dma.done.wait [#allocation7], 8192  }
  0x48   :  { %1244 = vsyncadd [#allocation7], 4294959104 }
  0x49   :  { %1245 = dma.done.wait [#allocation10], 1536  }
  0x4a   :  { %1246 = vsyncadd [#allocation10], 4294965760 }
  0x4b   :  { %1247 = dma.done.wait [#allocation13], 512  }
  0x4c   :  { %1248 = vsyncadd [#allocation13], 4294966784  ;;  %v1263_v0 = vmov 0   ;;  %v148_v1 = vld [vmem:[#allocation6 + $0x68] sm:$0xff]  ;;  %v150_v2 = vld [vmem:[#allocation6 + $0x78] sm:$0xff]  ;;  %vm114_vm0 = vcmask 1043456  }
  0x4d   :  { %103 = vst [vmem:[#allocation2] sm:$0xff] %v1263_v0  ;;  %v147_v3 = vld [vmem:[#allocation6 + $0x60] sm:$0xff]  ;;  %v192_v4 = vunpack.c.l.s8.bf16 %v148_v1  ;;  %v196_v5 = vunpack.c.h.s8.bf16 %v148_v1  ;;  %v194_v6 = vunpack.c.l.s8.bf16 %v150_v2  ;;  %v198_v7 = vunpack.c.h.s8.bf16 %v150_v2  ;;  %v149_v8 = vld [vmem:[#allocation6 + $0x70] sm:$0xff]  ;;  %v144_v11 = vld [vmem:[#allocation6 + $0x48] sm:$0xff]  ;;  %s1267_s4 = smov [#allocation14]  }
  0x4e   :  { %v195_v9 = vunpack.c.h.s8.bf16 %v147_v3  ;;  %v197_v10 = vunpack.c.h.s8.bf16 %v149_v8  ;;  %v146_v12 = vld [vmem:[#allocation6 + $0x58] sm:$0xff]  ;;  %v191_v13 = vunpack.c.l.s8.bf16 %v147_v3  ;;  %v193_v14 = vunpack.c.l.s8.bf16 %v149_v8  ;;  %v143_v17 = vld [vmem:[#allocation6 + $0x40] sm:$0xff]  ;;  %v145_v18 = vld [vmem:[#allocation6 + $0x50] sm:$0xff]  ;;  %s1001_s5 = sshll.u32 %s1267_s4, 4  ;;  %s1002_s5 = int_to_ptr.vmem [resolvable:$true] %s1001_s5 }
  0x4f   :  { %238 = vmatprep.subr.bf16.mxu0 %v196_v5  ;;  %279 = vmatprep.subr.bf16.mxu1 %v198_v7  ;;  %v188_v15 = vunpack.c.h.s8.bf16 %v144_v11  ;;  %v190_v16 = vunpack.c.h.s8.bf16 %v146_v12  ;;  %v187_v19 = vunpack.c.h.s8.bf16 %v143_v17  ;;  %v189_v20 = vunpack.c.h.s8.bf16 %v145_v18  ;;  %v140_v23 = vld [vmem:[#allocation6 + $0x28] sm:$0xff]  ;;  %v142_v24 = vld [vmem:[#allocation6 + $0x38] sm:$0xff]  ;;  %v139_v29 = vld [vmem:[#allocation6 + $0x20] sm:$0xff]  ;;  %s1221_s29 = scalar_lea.vmem %s1002_s5, 128  ;;  %p1226_p3 = scmp.lt.s32.totalorder %s1002_s5, %s1002_s5 }
  0x50   :  { %239 = vmatpush1.bf16.msra.mxu0 %v195_v9  ;;  %280 = vmatpush1.bf16.msra.mxu1 %v197_v10  ;;  %v184_v21 = vunpack.c.l.s8.bf16 %v144_v11  ;;  %v186_v22 = vunpack.c.l.s8.bf16 %v146_v12  ;;  %v183_v25 = vunpack.c.l.s8.bf16 %v143_v17  ;;  %v185_v26 = vunpack.c.l.s8.bf16 %v145_v18  ;;  %v141_v30 = vld [vmem:[#allocation6 + $0x30] sm:$0xff]  ;;  %v105_v32 = vld [vmem:[#allocation3 + $0x8] sm:$0xff]  ;;  %v136_v38 = vld [vmem:[#allocation6 + $0x8] sm:$0xff]  ;;  %p1222_p2 = scmp.ne.s32.totalorder %s1002_s5, %s1221_s29  ;;  %p1227_p4 = scmp.lt.s32.totalorder %s1221_s29, %s1221_s29 }
  0x51   :  { %240 = vmatprep.subr.bf16.mxu0 %v192_v4  ;;  %281 = vmatprep.subr.bf16.mxu1 %v194_v6  ;;  %v180_v27 = vunpack.c.h.s8.bf16 %v140_v23  ;;  %v182_v28 = vunpack.c.h.s8.bf16 %v142_v24  ;;  %vm115_vm1 = vcmask 949252   ;;  %v104_v31 = vld [vmem:[#allocation3] sm:$0xff]  ;;  %v179_v33 = vunpack.c.h.s8.bf16 %v139_v29  ;;  %v138_v39 = vld [vmem:[#allocation6 + $0x18] sm:$0xff]  ;;  %v135_v44 = vld [vmem:[#allocation6] sm:$0xff] }
  0x52   :  { %v181_v34 = vunpack.c.h.s8.bf16 %v141_v30  ;;  %vm116_vm2 = vmor %vm115_vm1, %vm114_vm0  ;;  %v176_v35 = vunpack.c.l.s8.bf16 %v140_v23  ;;  %v178_v36 = vunpack.c.l.s8.bf16 %v142_v24  ;;  %v1016_v37 = vpack.c.bf16 %v105_v32, %v104_v31  ;;  %v137_v45 = vld [vmem:[#allocation6 + $0x10] sm:$0xff]  ;;  %v164_v50 = vld [vmem:[#allocation6 + $0xe8] sm:$0xff]  ;;  %p1228_p5 = por %p1227_p4, %p1226_p3 }
  0x53   :  { %v175_v40 = vunpack.c.l.s8.bf16 %v139_v29  ;;  %v177_v41 = vunpack.c.l.s8.bf16 %v141_v30  ;;  %v172_v42 = vunpack.c.h.s8.bf16 %v136_v38  ;;  %v174_v43 = vunpack.c.h.s8.bf16 %v138_v39  ;;  %v166_v51 = vld [vmem:[#allocation6 + $0xf8] sm:$0xff]  ;;  %v163_v58 = vld [vmem:[#allocation6 + $0xe0] sm:$0xff]  ;;  %v165_v59 = vld [vmem:[#allocation6 + $0xf0] sm:$0xff] }
  0x54   :  { %241 = vmatpush1.bf16.msra.mxu0 %v191_v13  ;;  %282 = vmatpush1.bf16.msra.mxu1 %v193_v14  ;;  %117 = vst.msk [vmem:[#allocation2] sm:$0xff] %vm116_vm2, %v1016_v37  ;;  %v171_v46 = vunpack.c.h.s8.bf16 %v135_v44  ;;  %v173_v47 = vunpack.c.h.s8.bf16 %v137_v45  ;;  %v168_v48 = vunpack.c.l.s8.bf16 %v136_v38  ;;  %v170_v49 = vunpack.c.l.s8.bf16 %v138_v39  ;;  %v160_v0 = vld [vmem:[#allocation6 + $0xc8] sm:$0xff]  ;;  %v162_v1 = vld [vmem:[#allocation6 + $0xd8] sm:$0xff]  ;;  %v159_v6 = vld [vmem:[#allocation6 + $0xc0] sm:$0xff]  ;;  %p1229_p6 = pnand %p1228_p5, %p1222_p2 }
  0x55   :  { %242 = vmatprep.subr.bf16.mxu0 %v188_v15  ;;  %283 = vmatprep.subr.bf16.mxu1 %v190_v16  ;;  %v167_v54 = vunpack.c.l.s8.bf16 %v135_v44  ;;  %v169_v55 = vunpack.c.l.s8.bf16 %v137_v45  ;;  %v228_v56 = vunpack.c.h.s8.bf16 %v164_v50  ;;  %v230_v57 = vunpack.c.h.s8.bf16 %v166_v51  ;;  %v161_v7 = vld [vmem:[#allocation6 + $0xd0] sm:$0xff]  ;;  %v156_v12 = vld [vmem:[#allocation6 + $0xa8] sm:$0xff]  ;;  %v158_v13 = vld [vmem:[#allocation6 + $0xb8] sm:$0xff] }
  0x56   :  { %v227_v60 = vunpack.c.h.s8.bf16 %v163_v58  ;;  %v229_v61 = vunpack.c.h.s8.bf16 %v165_v59  ;;  %v224_v62 = vunpack.c.l.s8.bf16 %v164_v50  ;;  %v226_v63 = vunpack.c.l.s8.bf16 %v166_v51  ;;  %v155_v18 = vld [vmem:[#allocation6 + $0xa0] sm:$0xff]  ;;  %v152_v24 = vld [vmem:[#allocation6 + $0x88] sm:$0xff]  ;;  %v153_v31 = vld [vmem:[#allocation6 + $0x90] sm:$0xff] }
  0x57   :  { %v223_v2 = vunpack.c.l.s8.bf16 %v163_v58  ;;  %v225_v3 = vunpack.c.l.s8.bf16 %v165_v59  ;;  %v220_v4 = vunpack.c.h.s8.bf16 %v160_v0  ;;  %v222_v5 = vunpack.c.h.s8.bf16 %v162_v1  ;;  %v151_v30 = vld [vmem:[#allocation6 + $0x80] sm:$0xff]  ;;  %v554_v39 = vld [vmem:[#allocation8 + $0x38] sm:$0xff]  ;;  %v569_v44 = vld [vmem:[#allocation8 + $0xb0] sm:$0xff] }
  0x58   :  { %243 = vmatpush1.bf16.msra.mxu0 %v187_v19  ;;  %284 = vmatpush1.bf16.msra.mxu1 %v189_v20  ;;  %v219_v8 = vunpack.c.h.s8.bf16 %v159_v6  ;;  %v221_v9 = vunpack.c.h.s8.bf16 %v161_v7  ;;  %v216_v10 = vunpack.c.l.s8.bf16 %v160_v0  ;;  %v218_v11 = vunpack.c.l.s8.bf16 %v162_v1  ;;  %v157_v19 = vld [vmem:[#allocation6 + $0xb0] sm:$0xff]  ;;  %v552_v51 = vld [vmem:[#allocation8 + $0x28] sm:$0xff]  ;;  %v566_v0 = vld [vmem:[#allocation8 + $0x98] sm:$0xff] }
  0x59   :  { %244 = vmatprep.subr.bf16.mxu0 %v184_v21  ;;  %285 = vmatprep.subr.bf16.mxu1 %v186_v22  ;;  %v215_v14 = vunpack.c.l.s8.bf16 %v159_v6  ;;  %v217_v15 = vunpack.c.l.s8.bf16 %v161_v7  ;;  %v212_v16 = vunpack.c.h.s8.bf16 %v156_v12  ;;  %v214_v17 = vunpack.c.h.s8.bf16 %v158_v13 }
  0x5a   :  { %v211_v20 = vunpack.c.h.s8.bf16 %v155_v18  ;;  %v213_v21 = vunpack.c.h.s8.bf16 %v157_v19  ;;  %v208_v22 = vunpack.c.l.s8.bf16 %v156_v12  ;;  %v210_v23 = vunpack.c.l.s8.bf16 %v158_v13  ;;  %v564_v12 = vld [vmem:[#allocation8 + $0x88] sm:$0xff] }
  0x5b   :  { %v1327_v52 = vld [vmem:[#allocation2] sm:$0xff]  ;;  %v203_v32 = vunpack.c.h.s8.bf16 %v151_v30  ;;  %v201_v37 = vunpack.c.l.s8.bf16 %v153_v31  ;;  %v623_v50 = vunpack.c.l.s8.bf16 %v569_v44  ;;  %v588_v59 = vunpack.c.l.s8.bf16 %v552_v51 }
  0x5c   :  { %245 = vmatpush1.bf16.msra.mxu0 %v183_v25  ;;  %286 = vmatpush1.bf16.msra.mxu1 %v185_v26  ;;  %v1015_v53 = vcombine.high %v1327_v52, %v1327_v52  ;;  %v154_v25 = vld [vmem:[#allocation6 + $0x98] sm:$0xff]  ;;  %v207_v26 = vunpack.c.l.s8.bf16 %v155_v18  ;;  %v1014_v38 = vcombine.low %v1327_v52, %v1327_v52  ;;  %v568_v52 = vld [vmem:[#allocation8 + $0xa8] sm:$0xff]  ;;  %vm1266_vm3 = vmmov 0  }
  0x5d   :  { %246 = vmatprep.subr.bf16.mxu0 %v180_v27  ;;  %287 = vmatprep.subr.bf16.mxu1 %v182_v28  ;;  %v209_v27 = vunpack.c.l.s8.bf16 %v157_v19  ;;  %v204_v28 = vunpack.c.h.s8.bf16 %v152_v24  ;;  %v206_v29 = vunpack.c.h.s8.bf16 %v154_v25 }
  0x5e   :  { %270 = vmatprep.mubr.bf16.mxu0 %v1015_v53  ;;  %311 = vmatprep.mubr.bf16.mxu1 %v1015_v53  ;;  %v590_v53 = vunpack.c.h.s8.bf16 %v552_v51 }
  0x60   :  { %247 = vmatpush1.bf16.msra.mxu0 %v179_v33  ;;  %288 = vmatpush1.bf16.msra.mxu1 %v181_v34  ;;  %v205_v33 = vunpack.c.h.s8.bf16 %v153_v31  ;;  %v200_v34 = vunpack.c.l.s8.bf16 %v152_v24  ;;  %v578_v24 = vld [vmem:[#allocation8 + $0xf8] sm:$0xff] }
  0x61   :  { %248 = vmatprep.subr.bf16.mxu0 %v176_v35  ;;  %289 = vmatprep.subr.bf16.mxu1 %v178_v36  ;;  %v202_v35 = vunpack.c.l.s8.bf16 %v154_v25  ;;  %v199_v36 = vunpack.c.l.s8.bf16 %v151_v30 }
  0x64   :  { %249 = vmatpush1.bf16.msra.mxu0 %v175_v40  ;;  %290 = vmatpush1.bf16.msra.mxu1 %v177_v41  ;;  %v570_v40 = vld [vmem:[#allocation8 + $0xb8] sm:$0xff]  ;;  %v594_v41 = vunpack.c.h.s8.bf16 %v554_v39 }
  0x65   :  { %250 = vmatprep.subr.bf16.mxu0 %v172_v42  ;;  %291 = vmatprep.subr.bf16.mxu1 %v174_v43  ;;  %v626_v42 = vunpack.c.h.s8.bf16 %v570_v40  ;;  %v553_v43 = vld [vmem:[#allocation8 + $0x30] sm:$0xff] }
  0x66   :  { %v593_v45 = vunpack.c.h.s8.bf16 %v553_v43 }
  0x68   :  { %251 = vmatpush1.bf16.msra.mxu0 %v171_v46  ;;  %292 = vmatpush1.bf16.msra.mxu1 %v173_v47  ;;  %v625_v46 = vunpack.c.h.s8.bf16 %v569_v44  ;;  %v592_v47 = vunpack.c.l.s8.bf16 %v554_v39  ;;  %v559_v39 = vld [vmem:[#allocation8 + $0x60] sm:$0xff] }
  0x69   :  { %252 = vmatprep.subr.bf16.mxu0 %v168_v48  ;;  %293 = vmatprep.subr.bf16.mxu1 %v170_v49  ;;  %v624_v48 = vunpack.c.l.s8.bf16 %v570_v40  ;;  %v591_v49 = vunpack.c.l.s8.bf16 %v553_v43  ;;  %v575_v40 = vld [vmem:[#allocation8 + $0xe0] sm:$0xff] }
  0x6c   :  { %253 = vmatpush1.bf16.msra.mxu0 %v167_v54  ;;  %294 = vmatpush1.bf16.msra.mxu1 %v169_v55  ;;  %v622_v54 = vunpack.c.h.s8.bf16 %v568_v52  ;;  %v551_v55 = vld [vmem:[#allocation8 + $0x20] sm:$0xff] }
  0x6d   :  { %254 = vmatprep.subr.bf16.mxu0 %v228_v56  ;;  %295 = vmatprep.subr.bf16.mxu1 %v230_v57  ;;  %v567_v56 = vld [vmem:[#allocation8 + $0xa0] sm:$0xff]  ;;  %v589_v57 = vunpack.c.h.s8.bf16 %v551_v55 }
  0x6e   :  { %v621_v58 = vunpack.c.h.s8.bf16 %v567_v56 }
  0x70   :  { %255 = vmatpush2.bf16.msra.mxu0 %v227_v60  ;;  %296 = vmatpush2.bf16.msra.mxu1 %v229_v61  ;;  %v620_v60 = vunpack.c.l.s8.bf16 %v568_v52  ;;  %v587_v61 = vunpack.c.l.s8.bf16 %v551_v55 }
  0x71   :  { %256 = vmatprep.subr.bf16.mxu0 %v224_v62  ;;  %297 = vmatprep.subr.bf16.mxu1 %v226_v63  ;;  %v619_v62 = vunpack.c.l.s8.bf16 %v567_v56  ;;  %v550_v63 = vld [vmem:[#allocation8 + $0x18] sm:$0xff] }
  0x72   :  { %v586_v1 = vunpack.c.h.s8.bf16 %v550_v63  ;;  %v584_v7 = vunpack.c.l.s8.bf16 %v550_v63  ;;  %v555_v63 = vld [vmem:[#allocation8 + $0x40] sm:$0xff] }
  0x74   :  { %257 = vmatpush2.bf16.msra.mxu0 %v223_v2  ;;  %298 = vmatpush2.bf16.msra.mxu1 %v225_v3  ;;  %v618_v2 = vunpack.c.h.s8.bf16 %v566_v0  ;;  %v549_v3 = vld [vmem:[#allocation8 + $0x10] sm:$0xff] }
  0x75   :  { %258 = vmatprep.subr.bf16.mxu0 %v220_v4  ;;  %299 = vmatprep.subr.bf16.mxu1 %v222_v5  ;;  %v565_v4 = vld [vmem:[#allocation8 + $0x90] sm:$0xff]  ;;  %v585_v5 = vunpack.c.h.s8.bf16 %v549_v3 }
  0x76   :  { %v617_v6 = vunpack.c.h.s8.bf16 %v565_v4 }
  0x78   :  { %259 = vmatpush2.bf16.msra.mxu0 %v219_v8  ;;  %300 = vmatpush2.bf16.msra.mxu1 %v221_v9  ;;  %v616_v8 = vunpack.c.l.s8.bf16 %v566_v0  ;;  %v583_v9 = vunpack.c.l.s8.bf16 %v549_v3  ;;  %v571_v0 = vld [vmem:[#allocation8 + $0xc0] sm:$0xff] }
  0x79   :  { %260 = vmatprep.subr.bf16.mxu0 %v216_v10  ;;  %301 = vmatprep.subr.bf16.mxu1 %v218_v11  ;;  %v615_v10 = vunpack.c.l.s8.bf16 %v565_v4  ;;  %v548_v11 = vld [vmem:[#allocation8 + $0x8] sm:$0xff] }
  0x7a   :  { %v582_v13 = vunpack.c.h.s8.bf16 %v548_v11  ;;  %v580_v19 = vunpack.c.l.s8.bf16 %v548_v11  ;;  %v1341_v11 = vld [vmem:[#allocation12 + $0x1] ss:$8 sm:$0xf] }
  0x7c   :  { %261 = vmatpush2.bf16.msra.mxu0 %v215_v14  ;;  %302 = vmatpush2.bf16.msra.mxu1 %v217_v15  ;;  %v614_v14 = vunpack.c.h.s8.bf16 %v564_v12  ;;  %v547_v15 = vld [vmem:[#allocation8] sm:$0xff] }
  0x7d   :  { %262 = vmatprep.subr.bf16.mxu0 %v212_v16  ;;  %303 = vmatprep.subr.bf16.mxu1 %v214_v17  ;;  %v563_v16 = vld [vmem:[#allocation8 + $0x80] sm:$0xff]  ;;  %v581_v17 = vunpack.c.h.s8.bf16 %v547_v15 }
  0x7e   :  { %v613_v18 = vunpack.c.h.s8.bf16 %v563_v16 }
  0x80   :  { %263 = vmatpush2.bf16.msra.mxu0 %v211_v20  ;;  %304 = vmatpush2.bf16.msra.mxu1 %v213_v21  ;;  %v612_v20 = vunpack.c.l.s8.bf16 %v564_v12  ;;  %v579_v21 = vunpack.c.l.s8.bf16 %v547_v15 }
  0x81   :  { %264 = vmatprep.subr.bf16.mxu0 %v208_v22  ;;  %305 = vmatprep.subr.bf16.mxu1 %v210_v23  ;;  %v611_v22 = vunpack.c.l.s8.bf16 %v563_v16  ;;  %v562_v23 = vld [vmem:[#allocation8 + $0x78] sm:$0xff] }
  0x82   :  { %v610_v25 = vunpack.c.h.s8.bf16 %v562_v23  ;;  %v608_v31 = vunpack.c.l.s8.bf16 %v562_v23 }
  0x84   :  { %265 = vmatpush2.bf16.msra.mxu0 %v207_v26  ;;  %306 = vmatpush2.bf16.msra.mxu1 %v209_v27  ;;  %v642_v26 = vunpack.c.h.s8.bf16 %v578_v24  ;;  %v561_v27 = vld [vmem:[#allocation8 + $0x70] sm:$0xff] }
  0x85   :  { %266 = vmatprep.subr.bf16.mxu0 %v204_v28  ;;  %307 = vmatprep.subr.bf16.mxu1 %v206_v29  ;;  %v577_v28 = vld [vmem:[#allocation8 + $0xf0] sm:$0xff]  ;;  %v609_v29 = vunpack.c.h.s8.bf16 %v561_v27 }
  0x86   :  { %v641_v30 = vunpack.c.h.s8.bf16 %v577_v28 }
  0x88   :  { %267 = vmatpush2.bf16.msra.mxu0 %v203_v32  ;;  %308 = vmatpush2.bf16.msra.mxu1 %v205_v33  ;;  %v640_v32 = vunpack.c.l.s8.bf16 %v578_v24  ;;  %v607_v33 = vunpack.c.l.s8.bf16 %v561_v27 }
  0x89   :  { %268 = vmatprep.subr.bf16.mxu0 %v200_v34  ;;  %309 = vmatprep.subr.bf16.mxu1 %v202_v35  ;;  %v639_v34 = vunpack.c.l.s8.bf16 %v577_v28  ;;  %v560_v35 = vld [vmem:[#allocation8 + $0x68] sm:$0xff] }
  0x8a   :  { %v604_v43 = vunpack.c.l.s8.bf16 %v560_v35 }
  0x8c   :  { %269 = vmatpush2.bf16.msra.mxu0 %v199_v36  ;;  %310 = vmatpush2.bf16.msra.mxu1 %v201_v37  ;;  %v576_v36 = vld [vmem:[#allocation8 + $0xe8] sm:$0xff]  ;;  %v606_v37 = vunpack.c.h.s8.bf16 %v560_v35 }
  0x8d   :  { %643 = vmatprep.subr.bf16.mxu0 %v594_v41  ;;  %684 = vmatprep.subr.bf16.mxu1 %v626_v42  ;;  %v605_v41 = vunpack.c.h.s8.bf16 %v559_v39  ;;  %v637_v42 = vunpack.c.h.s8.bf16 %v575_v40  ;;  %v636_v44 = vunpack.c.l.s8.bf16 %v576_v36 }
  0x8f   :  { %271 = vmatmul.mubr.bf16.vlgmr.msra.gmra.mxu0 %v1014_v38  ;;  %312 = vmatmul.mubr.bf16.vlgmr.msra.gmra.mxu1 %v1014_v38  ;;  %v638_v38 = vunpack.c.h.s8.bf16 %v576_v36 }
  0x90   :  { %644 = vmatpush1.bf16.msra.mxu0 %v593_v45  ;;  %685 = vmatpush1.bf16.msra.mxu1 %v625_v46  ;;  %v603_v45 = vunpack.c.l.s8.bf16 %v559_v39  ;;  %v635_v46 = vunpack.c.l.s8.bf16 %v575_v40 }
  0x91   :  { %645 = vmatprep.subr.bf16.mxu0 %v592_v47  ;;  %686 = vmatprep.subr.bf16.mxu1 %v624_v48  ;;  %v558_v47 = vld [vmem:[#allocation8 + $0x58] sm:$0xff] }
  0x92   :  { %v574_v48 = vld [vmem:[#allocation8 + $0xd8] sm:$0xff] }
  0x93   :  { %v634_v51 = vunpack.c.h.s8.bf16 %v574_v48  ;;  %v632_v56 = vunpack.c.l.s8.bf16 %v574_v48 }
  0x94   :  { %646 = vmatpush1.bf16.msra.mxu0 %v591_v49  ;;  %687 = vmatpush1.bf16.msra.mxu1 %v623_v50  ;;  %v557_v49 = vld [vmem:[#allocation8 + $0x50] sm:$0xff]  ;;  %v602_v50 = vunpack.c.h.s8.bf16 %v558_v47 }
  0x95   :  { %647 = vmatprep.subr.bf16.mxu0 %v590_v53  ;;  %688 = vmatprep.subr.bf16.mxu1 %v622_v54  ;;  %v601_v52 = vunpack.c.h.s8.bf16 %v557_v49  ;;  %v573_v53 = vld [vmem:[#allocation8 + $0xd0] sm:$0xff]  ;;  %v600_v54 = vunpack.c.l.s8.bf16 %v558_v47 }
  0x96   :  { %v633_v55 = vunpack.c.h.s8.bf16 %v573_v53 }
  0x98   :  { %648 = vmatpush1.bf16.msra.mxu0 %v589_v57  ;;  %689 = vmatpush1.bf16.msra.mxu1 %v621_v58  ;;  %v556_v57 = vld [vmem:[#allocation8 + $0x48] sm:$0xff] }
  0x99   :  { %649 = vmatprep.subr.bf16.mxu0 %v588_v59  ;;  %690 = vmatprep.subr.bf16.mxu1 %v620_v60  ;;  %v572_v58 = vld [vmem:[#allocation8 + $0xc8] sm:$0xff]  ;;  %v599_v59 = vunpack.c.l.s8.bf16 %v557_v49  ;;  %v631_v60 = vunpack.c.l.s8.bf16 %v573_v53  ;;  %v596_v3 = vunpack.c.l.s8.bf16 %v556_v57 }
  0x9a   :  { %v628_v4 = vunpack.c.l.s8.bf16 %v572_v58 }
  0x9c   :  { %650 = vmatpush1.bf16.msra.mxu0 %v587_v61  ;;  %691 = vmatpush1.bf16.msra.mxu1 %v619_v62  ;;  %v598_v61 = vunpack.c.h.s8.bf16 %v556_v57  ;;  %v630_v62 = vunpack.c.h.s8.bf16 %v572_v58 }
  0x9d   :  { %651 = vmatprep.subr.bf16.mxu0 %v586_v1  ;;  %692 = vmatprep.subr.bf16.mxu1 %v618_v2  ;;  %v597_v1 = vunpack.c.h.s8.bf16 %v555_v63  ;;  %v629_v2 = vunpack.c.h.s8.bf16 %v571_v0 }
  0xa0   :  { %652 = vmatpush1.bf16.msra.mxu0 %v585_v5  ;;  %693 = vmatpush1.bf16.msra.mxu1 %v617_v6  ;;  %v595_v5 = vunpack.c.l.s8.bf16 %v555_v63  ;;  %v627_v6 = vunpack.c.l.s8.bf16 %v571_v0 }
  0xa1   :  { %653 = vmatprep.subr.bf16.mxu0 %v584_v7  ;;  %694 = vmatprep.subr.bf16.mxu1 %v616_v8  ;;  %v389_v7 = vlaneseq }
  0xa3   :  { %v1333_v8 = vshrl.u32 %v389_v7, 7 }
  0xa4   :  { %654 = vmatpush1.bf16.msra.mxu0 %v583_v9  ;;  %695 = vmatpush1.bf16.msra.mxu1 %v615_v10 }
  0xa5   :  { %655 = vmatprep.subr.bf16.mxu0 %v582_v13  ;;  %696 = vmatprep.subr.bf16.mxu1 %v614_v14  ;;  %v1336_v9 = vsub.s32 0, %v1333_v8  ;;  %v1339_v10 = vsub.s32 2, %v1333_v8  ;;  %v1365_v23 = vsub.s32 3, %v1333_v8 }
  0xa8   :  { %656 = vmatpush1.bf16.msra.mxu0 %v581_v17  ;;  %697 = vmatpush1.bf16.msra.mxu1 %v613_v18  ;;  %v392_v18 = vrot.slane %v1341_v11, %v1336_v9 }
  0xa9   :  { %657 = vmatprep.subr.bf16.mxu0 %v580_v19  ;;  %698 = vmatprep.subr.bf16.mxu1 %v612_v20  ;;  %v400_v19 = vrot.slane %v1341_v11, %v1339_v10 }
  0xac   :  { %658 = vmatpush1.bf16.msra.mxu0 %v579_v21  ;;  %699 = vmatpush1.bf16.msra.mxu1 %v611_v22  ;;  %v1360_v21 = vsub.s32 1, %v1333_v8 }
  0xad   :  { %659 = vmatprep.subr.bf16.mxu0 %v610_v25  ;;  %700 = vmatprep.subr.bf16.mxu1 %v642_v26 }
  0xb0   :  { %660 = vmatpush2.bf16.msra.mxu0 %v609_v29  ;;  %701 = vmatpush2.bf16.msra.mxu1 %v641_v30 }
  0xb1   :  { %661 = vmatprep.subr.bf16.mxu0 %v608_v31  ;;  %702 = vmatprep.subr.bf16.mxu1 %v640_v32 }
  0xb4   :  { %662 = vmatpush2.bf16.msra.mxu0 %v607_v33  ;;  %703 = vmatpush2.bf16.msra.mxu1 %v639_v34 }
  0xb5   :  { %663 = vmatprep.subr.bf16.mxu0 %v606_v37  ;;  %704 = vmatprep.subr.bf16.mxu1 %v638_v38 }
  0xb8   :  { %664 = vmatpush2.bf16.msra.mxu0 %v605_v41  ;;  %705 = vmatpush2.bf16.msra.mxu1 %v637_v42 }
  0xb9   :  { %665 = vmatprep.subr.bf16.mxu0 %v604_v43  ;;  %706 = vmatprep.subr.bf16.mxu1 %v636_v44 }
  0xbc   :  { %666 = vmatpush2.bf16.msra.mxu0 %v603_v45  ;;  %707 = vmatpush2.bf16.msra.mxu1 %v635_v46 }
  0xbd   :  { %667 = vmatprep.subr.bf16.mxu0 %v602_v50  ;;  %708 = vmatprep.subr.bf16.mxu1 %v634_v51 }
  0xc0   :  { %668 = vmatpush2.bf16.msra.mxu0 %v601_v52  ;;  %709 = vmatpush2.bf16.msra.mxu1 %v633_v55 }
  0xc1   :  { %669 = vmatprep.subr.bf16.mxu0 %v600_v54  ;;  %710 = vmatprep.subr.bf16.mxu1 %v632_v56 }
  0xc4   :  { %670 = vmatpush2.bf16.msra.mxu0 %v599_v59  ;;  %711 = vmatpush2.bf16.msra.mxu1 %v631_v60 }
  0xc5   :  { %671 = vmatprep.subr.bf16.mxu0 %v598_v61  ;;  %712 = vmatprep.subr.bf16.mxu1 %v630_v62 }
  0xc8   :  { %672 = vmatpush2.bf16.msra.mxu0 %v597_v1  ;;  %713 = vmatpush2.bf16.msra.mxu1 %v629_v2 }
  0xc9   :  { %673 = vmatprep.subr.bf16.mxu0 %v596_v3  ;;  %714 = vmatprep.subr.bf16.mxu1 %v628_v4 }
  0xcc   :  { %674 = vmatpush2.bf16.msra.mxu0 %v595_v5  ;;  %715 = vmatpush2.bf16.msra.mxu1 %v627_v6 }
 0x14f   :  { %v1343_v12 = vpop.f32.mrf.mxu0  ;;  %v1345_v13 = vpop.f32.mrf.mxu1 }
 0x150   :  { %v320_v14 = vrot.slane %v1343_v12, 4  ;;  %v348_v15 = vmul.f32 %v1343_v12, %v1343_v12  ;;  %v332_v16 = vrot.slane %v1345_v13, 4  ;;  %v350_v17 = vmul.f32 %v1345_v13, %v1345_v13 }
 0x151   :  { %v1357_v20 = vpop.f32.mrf.mxu0  ;;  %v1362_v22 = vpop.f32.mrf.mxu1 }
 0x152   :  { %v321_v24 = vadd.f32 %v320_v14, %v1343_v12  ;;  %v352_v25 = vrot.slane %v348_v15, 4  ;;  %v333_v26 = vadd.f32 %v332_v16, %v1345_v13  ;;  %v364_v27 = vrot.slane %v350_v17, 4 }
 0x153   :  { %v326_v28 = vrot.slane %v1357_v20, 4  ;;  %v349_v29 = vmul.f32 %v1357_v20, %v1357_v20  ;;  %v338_v30 = vrot.slane %v1362_v22, 4  ;;  %v351_v31 = vmul.f32 %v1362_v22, %v1362_v22  ;;  %v276_v32 = vpop.f32.mrf.mxu0  ;;  %v317_v33 = vpop.f32.mrf.mxu1 }
 0x154   :  { %v322_v34 = vrot.slane %v321_v24, 2  ;;  %v353_v35 = vadd.f32 %v352_v25, %v348_v15  ;;  %v334_v36 = vrot.slane %v333_v26, 2  ;;  %v365_v37 = vadd.f32 %v364_v27, %v350_v17 }
 0x155   :  { %v327_v38 = vadd.f32 %v326_v28, %v1357_v20  ;;  %v358_v39 = vrot.slane %v349_v29, 4  ;;  %v339_v40 = vadd.f32 %v338_v30, %v1362_v22  ;;  %v370_v41 = vrot.slane %v351_v31, 4  ;;  %v277_v42 = vpop.f32.mrf.mxu0  ;;  %v318_v43 = vpop.f32.mrf.mxu1 }
 0x156   :  { %v323_v44 = vadd.f32 %v322_v34, %v321_v24  ;;  %v354_v45 = vrot.slane %v353_v35, 2  ;;  %v335_v46 = vadd.f32 %v334_v36, %v333_v26  ;;  %v366_v47 = vrot.slane %v365_v37, 2 }
 0x157   :  { %v328_v48 = vrot.slane %v327_v38, 2  ;;  %v359_v49 = vadd.f32 %v358_v39, %v349_v29  ;;  %v340_v50 = vrot.slane %v339_v40, 2  ;;  %v371_v51 = vadd.f32 %v370_v41, %v351_v31 }
 0x158   :  { %v324_v52 = vrot.slane %v323_v44, 1  ;;  %v355_v53 = vadd.f32 %v354_v45, %v353_v35  ;;  %v336_v54 = vrot.slane %v335_v46, 1  ;;  %v367_v55 = vadd.f32 %v366_v47, %v365_v37 }
 0x159   :  { %v329_v56 = vadd.f32 %v328_v48, %v327_v38  ;;  %v360_v57 = vrot.slane %v359_v49, 2  ;;  %v341_v58 = vadd.f32 %v340_v50, %v339_v40  ;;  %v372_v59 = vrot.slane %v371_v51, 2 }
 0x15a   :  { %v325_v60 = vadd.f32 %v324_v52, %v323_v44  ;;  %v356_v61 = vrot.slane %v355_v53, 1  ;;  %v337_v62 = vadd.f32 %v336_v54, %v335_v46  ;;  %v368_v63 = vrot.slane %v367_v55, 1 }
 0x15b   :  { %v330_v0 = vrot.slane %v329_v56, 1  ;;  %v361_v1 = vadd.f32 %v360_v57, %v359_v49  ;;  %v342_v2 = vrot.slane %v341_v58, 1  ;;  %v373_v3 = vadd.f32 %v372_v59, %v371_v51 }
 0x15c   :  { %v344_v4 = vmul.f32 0.125, %v325_v60  ;;  %v357_v5 = vadd.f32 %v356_v61, %v355_v53  ;;  %v346_v6 = vmul.f32 0.125, %v337_v62  ;;  %v369_v7 = vadd.f32 %v368_v63, %v367_v55  ;;  %v119_v60 = vld [vmem:[#allocation12] ss:$8 sm:$0xf] }
 0x15d   :  { %v331_v14 = vadd.f32 %v330_v0, %v329_v56  ;;  %v362_v15 = vrot.slane %v361_v1, 1  ;;  %v343_v16 = vadd.f32 %v342_v2, %v341_v58  ;;  %v374_v17 = vrot.slane %v373_v3, 1 }
 0x15e   :  { %v376_v24 = vmul.f32 0.125, %v357_v5  ;;  %v380_v25 = vmul.f32 %v344_v4, %v344_v4  ;;  %v378_v26 = vmul.f32 0.125, %v369_v7  ;;  %v382_v27 = vmul.f32 %v346_v6, %v346_v6 }
 0x15f   :  { %v345_v28 = vmul.f32 0.125, %v331_v14  ;;  %v363_v29 = vadd.f32 %v362_v15, %v361_v1  ;;  %v347_v30 = vmul.f32 0.125, %v343_v16  ;;  %v375_v31 = vadd.f32 %v374_v17, %v373_v3 }
 0x160   :  { %v384_v32 = vsub.f32 %v376_v24, %v380_v25  ;;  %v386_v33 = vsub.f32 %v378_v26, %v382_v27  ;;  %v396_v34 = vrot.slane %v1341_v11, %v1360_v21  ;;  %v404_v35 = vrot.slane %v1341_v11, %v1365_v23  ;;  %v123_v25 = vld [vmem:[#allocation12 + $0x2] ss:$8 sm:$0xf] }
 0x161   :  { %v377_v36 = vmul.f32 0.125, %v363_v29  ;;  %v381_v37 = vmul.f32 %v345_v28, %v345_v28  ;;  %v379_v38 = vmul.f32 0.125, %v375_v31  ;;  %v383_v39 = vmul.f32 %v347_v30, %v347_v30 }
 0x162   :  { %v409_v40 = vmul.f32 %v392_v18, %v384_v32  ;;  %v411_v41 = vmul.f32 %v400_v19, %v386_v33  ;;  %v1264_v50 = vmov 1966171168  }
 0x163   :  { %v385_v42 = vsub.f32 %v377_v36, %v381_v37  ;;  %v387_v43 = vsub.f32 %v379_v38, %v383_v39  ;;  %v428_v51 = vunpack.c.l.s4 %v1264_v50 }
 0x164   :  { %v413_v44 = vadd.f32 1e-05, %v409_v40  ;;  %v415_v45 = vadd.f32 1e-05, %v411_v41 }
 0x165   :  { %v410_v46 = vmul.f32 %v396_v34, %v385_v42  ;;  %v412_v47 = vmul.f32 %v404_v35, %v387_v43  ;;  %v429_v52 = vunpack.c.0.s8 %v428_v51 }
 0x166   :  { %1087 = vrsqrt.f32 %v413_v44 }
 0x167   :  { %v414_v48 = vadd.f32 1e-05, %v410_v46  ;;  %v416_v49 = vadd.f32 1e-05, %v412_v47  ;;  %1089 = vrsqrt.f32 %v415_v45  ;;  %v1388_v11 = vsub.s32 %v429_v52, %v1333_v8  ;;  %v851_v45 = vld [vmem:[#allocation9 + $0x18] sm:$0xff]  ;;  %v850_v52 = vld [vmem:[#allocation9 + $0x10] sm:$0xff] }
 0x168   :  { %v863_v47 = vunpack.c.h.s8.bf16 %v851_v45  ;;  %v862_v50 = vunpack.c.l.s8.bf16 %v851_v45 }
 0x169   :  { %1091 = vrsqrt.f32 %v414_v48 }
 0x16a   :  { %1093 = vrsqrt.f32 %v416_v49  ;;  %v854_v49 = vld [vmem:[#allocation9 + $0x30] sm:$0xff] }
 0x16b   :  { %v869_v51 = vunpack.c.h.s8.bf16 %v854_v49 }
 0x173   :  { %v1088_v18 = vpop.eup %1087 }
 0x174   :  { %v1090_v53 = vpop.eup %1089 }
 0x176   :  { %v1092_v19 = vpop.eup %1091 }
 0x177   :  { %v1094_v54 = vpop.eup %1093  ;;  %v425_v55 = vcombine.low %v1088_v18, %v1092_v19  ;;  %v861_v18 = vunpack.c.h.s8.bf16 %v850_v52  ;;  %v853_v19 = vld [vmem:[#allocation9 + $0x28] sm:$0xff] }
 0x178   :  { %v426_v56 = vcombine.low %v1090_v53, %v1094_v54  ;;  %v868_v53 = vunpack.c.l.s8.bf16 %v854_v49  ;;  %v860_v54 = vunpack.c.l.s8.bf16 %v850_v52 }
 0x179   :  { %v433_v57 = vrot.slane %v425_v55, %v1388_v11  ;;  %v867_v55 = vunpack.c.h.s8.bf16 %v853_v19 }
 0x17a   :  { %v440_v58 = vrot.slane %v426_v56, %v1388_v11  ;;  %v849_v56 = vld [vmem:[#allocation9 + $0x8] sm:$0xff] }
 0x17c   :  { %v441_v59 = vcombine.low %v433_v57, %v440_v58  ;;  %v859_v57 = vunpack.c.h.s8.bf16 %v849_v56  ;;  %v866_v58 = vunpack.c.l.s8.bf16 %v853_v19 }
 0x17e   :  { %v448_v61 = vrot.slane %v441_v59, %v1388_v11  ;;  %v852_v59 = vld [vmem:[#allocation9 + $0x20] sm:$0xff] }
 0x180   :  { %v450_v62 = vmul.f32 %v448_v61, %v119_v60  ;;  %v858_v60 = vunpack.c.l.s8.bf16 %v849_v56  ;;  %v865_v61 = vunpack.c.h.s8.bf16 %v852_v59 }
 0x182   :  { %v463_v63 = vrot.slane %v450_v62, %v1339_v10  ;;  %v467_v0 = vrot.slane %v450_v62, %v1365_v23  ;;  %v455_v8 = vrot.slane %v450_v62, %v1336_v9  ;;  %v459_v1 = vrot.slane %v450_v62, %v1360_v21  ;;  %v848_v62 = vld [vmem:[#allocation9] sm:$0xff] }
 0x184   :  { %v474_v2 = vmul.f32 %v463_v63, %v346_v6  ;;  %v475_v3 = vmul.f32 %v467_v0, %v347_v30  ;;  %v472_v5 = vmul.f32 %v455_v8, %v344_v4  ;;  %v473_v7 = vmul.f32 %v459_v1, %v345_v28 }
 0x185   :  { %v509_v29 = vmul.f32 %v467_v0, %v1362_v22  ;;  %v507_v31 = vmul.f32 %v459_v1, %v1357_v20  ;;  %v506_v6 = vmul.f32 %v455_v8, %v1343_v12  ;;  %v508_v4 = vmul.f32 %v463_v63, %v1345_v13 }
 0x186   :  { %v481_v14 = vcombine.low %v474_v2, %v475_v3  ;;  %v480_v15 = vcombine.low %v472_v5, %v473_v7  ;;  %v857_v63 = vunpack.c.h.s8.bf16 %v848_v62  ;;  %v864_v0 = vunpack.c.l.s8.bf16 %v852_v59 }
 0x187   :  { %v856_v8 = vunpack.c.l.s8.bf16 %v848_v62 }
 0x188   :  { %v495_v16 = vrot.slane %v481_v14, %v1388_v11  ;;  %v488_v17 = vrot.slane %v480_v15, %v1388_v11 }
 0x18a   :  { %v496_v24 = vcombine.low %v488_v17, %v495_v16 }
 0x18c   :  { %v503_v26 = vrot.slane %v496_v24, %v1388_v11 }
 0x18e   :  { %v505_v27 = vsub.f32 %v123_v25, %v503_v26 }
 0x190   :  { %v518_v28 = vrot.slane %v505_v27, %v1360_v21  ;;  %v526_v30 = vrot.slane %v505_v27, %v1365_v23  ;;  %v514_v32 = vrot.slane %v505_v27, %v1336_v9  ;;  %v522_v33 = vrot.slane %v505_v27, %v1339_v10  ;;  %v855_v10 = vld [vmem:[#allocation9 + $0x38] sm:$0xff] }
 0x191   :  { %v871_v46 = vunpack.c.h.s8.bf16 %v855_v10  ;;  %v870_v48 = vunpack.c.l.s8.bf16 %v855_v10 }
 0x192   :  { %v532_v34 = vadd.f32 %v518_v28, %v507_v31  ;;  %v534_v35 = vadd.f32 %v526_v30, %v509_v29  ;;  %v531_v36 = vadd.f32 %v514_v32, %v506_v6  ;;  %v533_v37 = vadd.f32 %v522_v33, %v508_v4 }
 0x193   :  { %1017 = vmatprep.subr.bf16.mxu0 %v871_v46 }
 0x194   :  { %v536_v38 = vmul.f32 0.01, %v532_v34  ;;  %v538_v22 = vmul.f32 0.01, %v534_v35  ;;  %v535_v39 = vmul.f32 0.01, %v531_v36 }
 0x195   :  { %v537_v20 = vmul.f32 0.01, %v533_v37 }
 0x196   :  { %v540_v40 = vmax.f32 %v532_v34, %v536_v38  ;;  %v542_v12 = vmax.f32 %v534_v35, %v538_v22  ;;  %v539_v41 = vmax.f32 %v531_v36, %v535_v39 }
 0x197   :  { %v541_v13 = vmax.f32 %v533_v37, %v537_v20  ;;  %v127_v20 = vld [vmem:[#allocation12 + $0x13] ss:$8 sm:$0x3] }
 0x198   :  { %v544_v42 = vpack.c.bf16 %v540_v40, %v540_v40  ;;  %v546_v43 = vpack.c.bf16 %v542_v12, %v542_v12  ;;  %v543_v44 = vpack.c.bf16 %v539_v41, %v539_v41  ;;  %v763_v10 = vrot.slane %v127_v20, %v1336_v9 }
 0x199   :  { %v545_v23 = vpack.c.bf16 %v541_v13, %v541_v13  ;;  %v767_v52 = vrot.slane %v127_v20, %v1360_v21 }
 0x19a   :  { %675 = vmatprep.mubr.bf16.mxu0 %v544_v42  ;;  %716 = vmatprep.mubr.bf16.mxu1 %v546_v43 }
 0x19b   :  { %676 = vmatmul.mubr.bf16.vlgmr.msra.gmra.mxu0 %v543_v44  ;;  %717 = vmatmul.mubr.bf16.vlgmr.msra.gmra.mxu1 %v545_v23 }
 0x19c   :  { %1018 = vmatpush3.bf16.msra.mxu0 %v863_v47 }
 0x19d   :  { %1019 = vmatprep.subr.bf16.mxu0 %v870_v48 }
 0x1a0   :  { %1020 = vmatpush3.bf16.msra.mxu0 %v862_v50 }
 0x1a1   :  { %1021 = vmatprep.subr.bf16.mxu0 %v869_v51 }
 0x1a4   :  { %1022 = vmatpush3.bf16.msra.mxu0 %v861_v18 }
 0x1a5   :  { %1023 = vmatprep.subr.bf16.mxu0 %v868_v53 }
 0x1a8   :  { %1024 = vmatpush3.bf16.msra.mxu0 %v860_v54 }
 0x1a9   :  { %1025 = vmatprep.subr.bf16.mxu0 %v867_v55 }
 0x1ac   :  { %1026 = vmatpush3.bf16.msra.mxu0 %v859_v57 }
 0x1ad   :  { %1027 = vmatprep.subr.bf16.mxu0 %v866_v58 }
 0x1b0   :  { %1028 = vmatpush3.bf16.msra.mxu0 %v858_v60  ;;  %v125_v60 = vld [vmem:[#allocation12 + $0x3] ss:$8 sm:$0x3] }
 0x1b1   :  { %1029 = vmatprep.subr.bf16.mxu0 %v865_v61 }
 0x1b4   :  { %1030 = vmatpush3.bf16.msra.mxu0 %v857_v63 }
 0x1b5   :  { %1031 = vmatprep.subr.bf16.mxu0 %v864_v0 }
 0x1b8   :  { %1032 = vmatpush3.bf16.msra.mxu0 %v856_v8 }
 0x25b   :  { %v677_v1 = vpop.f32.mrf.mxu0  ;;  %v718_v2 = vpop.f32.mrf.mxu1 }
 0x25c   :  { %v1408_v3 = vadd.f32 %v718_v2, %v677_v1 }
 0x25d   :  { %v679_v5 = vpop.f32.mrf.mxu0  ;;  %v720_v7 = vpop.f32.mrf.mxu1 }
 0x25e   :  { %v725_v14 = vrot.slane %v1408_v3, 4  ;;  %v739_v15 = vmul.f32 %v1408_v3, %v1408_v3  ;;  %v721_v16 = vadd.f32 %v720_v7, %v679_v5  ;;  %v129_v7 = vld [vmem:[#allocation12 + $0x4] ss:$8 sm:$0x3] }
 0x25f   :  { %v681_v17 = vpop.f32.mrf.mxu0  ;;  %v722_v24 = vpop.f32.mrf.mxu1 }
 0x260   :  { %v726_v25 = vadd.f32 %v725_v14, %v1408_v3  ;;  %v741_v26 = vrot.slane %v739_v15, 4  ;;  %v731_v27 = vrot.slane %v721_v16, 4  ;;  %v740_v29 = vmul.f32 %v721_v16, %v721_v16 }
 0x261   :  { %v682_v31 = vpop.f32.mrf.mxu0  ;;  %v723_v6 = vpop.f32.mrf.mxu1 }
 0x262   :  { %v727_v4 = vrot.slane %v726_v25, 2  ;;  %v742_v28 = vadd.f32 %v741_v26, %v739_v15  ;;  %v732_v30 = vadd.f32 %v731_v27, %v721_v16  ;;  %v747_v32 = vrot.slane %v740_v29, 4 }
 0x264   :  { %v728_v33 = vadd.f32 %v727_v4, %v726_v25  ;;  %v743_v34 = vrot.slane %v742_v28, 2  ;;  %v733_v35 = vrot.slane %v732_v30, 2  ;;  %v748_v36 = vadd.f32 %v747_v32, %v740_v29 }
 0x266   :  { %v729_v37 = vrot.slane %v728_v33, 1  ;;  %v744_v38 = vadd.f32 %v743_v34, %v742_v28  ;;  %v734_v22 = vadd.f32 %v733_v35, %v732_v30  ;;  %v749_v39 = vrot.slane %v748_v36, 2  ;;  %v941_v35 = vld [vmem:[#allocation11 + $0x8] sm:$0xff] }
 0x267   :  { %v1265_v34 = vmov 0.0  }
 0x268   :  { %v730_v40 = vadd.f32 %v729_v37, %v728_v33  ;;  %v745_v12 = vrot.slane %v744_v38, 1  ;;  %v735_v41 = vrot.slane %v734_v22, 1  ;;  %v750_v13 = vadd.f32 %v749_v39, %v748_v36  ;;  %v943_v33 = vld [vmem:[#allocation11 + $0x18] sm:$0xff]  ;;  %1048 = vmatprep.subr.bf16.mxu1 %v1265_v34  ;;  %1064 = vmatprep.mubr.msk.bf16.mxu1 %vm1266_vm3, %v1265_v34 }
 0x269   :  { %v947_v36 = vunpack.c.h.s8.bf16 %v941_v35  ;;  %v946_v37 = vunpack.c.l.s8.bf16 %v941_v35 }
 0x26a   :  { %v737_v42 = vmul.f32 0.125, %v730_v40  ;;  %v746_v43 = vadd.f32 %v745_v12, %v744_v38  ;;  %v736_v44 = vadd.f32 %v735_v41, %v734_v22  ;;  %v751_v23 = vrot.slane %v750_v13, 1  ;;  %v940_v38 = vld [vmem:[#allocation11] sm:$0xff] }
 0x26b   :  { %v945_v22 = vunpack.c.h.s8.bf16 %v940_v38  ;;  %v944_v39 = vunpack.c.l.s8.bf16 %v940_v38 }
 0x26c   :  { %v753_v45 = vmul.f32 0.125, %v746_v43  ;;  %v755_v46 = vmul.f32 %v737_v42, %v737_v42  ;;  %v738_v47 = vmul.f32 0.125, %v736_v44  ;;  %v752_v48 = vadd.f32 %v751_v23, %v750_v13 }
 0x26e   :  { %v757_v49 = vsub.f32 %v753_v45, %v755_v46  ;;  %v754_v50 = vmul.f32 0.125, %v752_v48  ;;  %v756_v51 = vmul.f32 %v738_v47, %v738_v47 }
 0x270   :  { %v770_v18 = vmul.f32 %v763_v10, %v757_v49  ;;  %v758_v53 = vsub.f32 %v754_v50, %v756_v51 }
 0x272   :  { %v772_v19 = vadd.f32 1e-05, %v770_v18  ;;  %v771_v54 = vmul.f32 %v767_v52, %v758_v53 }
 0x274   :  { %v773_v55 = vadd.f32 1e-05, %v771_v54  ;;  %1095 = vrsqrt.f32 %v772_v19  ;;  %v131_v54 = vld [vmem:[#allocation12 + $0x1c] ss:$0 sm:$0xff] }
 0x276   :  { %1097 = vrsqrt.f32 %v773_v55 }
 0x281   :  { %v1096_v56 = vpop.eup %1095 }
 0x283   :  { %v1098_v57 = vpop.eup %1097 }
 0x284   :  { %v778_v58 = vcombine.low %v1096_v56, %v1098_v57 }
 0x286   :  { %v785_v59 = vrot.slane %v778_v58, %v1388_v11  ;;  %v130_v58 = vld [vmem:[#allocation12 + $0x14] ss:$0 sm:$0xff] }
 0x288   :  { %v792_v61 = vrot.slane %v785_v59, %v1388_v11 }
 0x28a   :  { %v794_v62 = vmul.f32 %v792_v61, %v125_v60  ;;  %v132_v61 = vld [vmem:[#allocation12 + $0x5] ss:$0 sm:$0xff] }
 0x28c   :  { %v799_v63 = vrot.slane %v794_v62, %v1336_v9  ;;  %v803_v0 = vrot.slane %v794_v62, %v1360_v21 }
 0x28e   :  { %v806_v8 = vmul.f32 %v799_v63, %v737_v42  ;;  %v807_v1 = vmul.f32 %v803_v0, %v738_v47  ;;  %v828_v17 = vmul.f32 %v803_v0, %v721_v16  ;;  %v827_v25 = vmul.f32 %v799_v63, %v1408_v3 }
 0x290   :  { %v810_v2 = vcombine.low %v806_v8, %v807_v1 }
 0x292   :  { %v817_v5 = vrot.slane %v810_v2, %v1388_v11 }
 0x294   :  { %v824_v14 = vrot.slane %v817_v5, %v1388_v11  ;;  %v951_v11 = vunpack.c.h.s8.bf16 %v943_v33 }
 0x296   :  { %v826_v15 = vsub.f32 %v129_v7, %v824_v14  ;;  %1049 = vmatpush3.bf16.msra.mxu1 %v951_v11  ;;  %v133_v7 = vld [vmem:[#allocation12 + $0xd] ss:$0 sm:$0xff]  ;;  %v134_v14 = vld [vmem:[#allocation12 + $0x15] ss:$0 sm:$0xff] }
 0x297   :  { %1050 = vmatprep.subr.bf16.mxu1 %v1265_v34 }
 0x298   :  { %v837_v24 = vrot.slane %v826_v15, %v1360_v21  ;;  %v833_v26 = vrot.slane %v826_v15, %v1336_v9  ;;  %v950_v21 = vunpack.c.l.s8.bf16 %v943_v33  ;;  %v942_v9 = vld [vmem:[#allocation11 + $0x10] sm:$0xff] }
 0x299   :  { %v949_v3 = vunpack.c.h.s8.bf16 %v942_v9  ;;  %v948_v16 = vunpack.c.l.s8.bf16 %v942_v9 }
 0x29a   :  { %v841_v27 = vadd.f32 %v837_v24, %v828_v17  ;;  %v840_v29 = vadd.f32 %v833_v26, %v827_v25  ;;  %1051 = vmatpush3.bf16.msra.mxu1 %v950_v21 }
 0x29b   :  { %1052 = vmatprep.subr.bf16.mxu1 %v1265_v34 }
 0x29c   :  { %v843_v31 = vmul.f32 0.01, %v841_v27  ;;  %v842_v6 = vmul.f32 0.01, %v840_v29 }
 0x29e   :  { %v845_v4 = vmax.f32 %v841_v27, %v843_v31  ;;  %v844_v28 = vmax.f32 %v840_v29, %v842_v6  ;;  %1053 = vmatpush3.bf16.msra.mxu1 %v949_v3 }
 0x29f   :  { %1054 = vmatprep.subr.bf16.mxu1 %v1265_v34 }
 0x2a0   :  { %v847_v30 = vpack.c.bf16 %v845_v4, %v845_v4  ;;  %v846_v32 = vpack.c.bf16 %v844_v28, %v844_v28 }
 0x2a2   :  { %904 = vmatprep.mubr.bf16.mxu0 %v847_v30  ;;  %1055 = vmatpush3.bf16.msra.mxu1 %v948_v16 }
 0x2a3   :  { %905 = vmatmul.mubr.bf16.vlgmr.msra.gmra.mxu0 %v846_v32  ;;  %1056 = vmatprep.subr.bf16.mxu1 %v1265_v34 }
 0x2a6   :  { %1057 = vmatpush3.bf16.msra.mxu1 %v947_v36 }
 0x2a7   :  { %1058 = vmatprep.subr.bf16.mxu1 %v1265_v34 }
 0x2aa   :  { %1059 = vmatpush3.bf16.msra.mxu1 %v946_v37 }
 0x2ab   :  { %1060 = vmatprep.subr.bf16.mxu1 %v1265_v34 }
 0x2ae   :  { %1061 = vmatpush3.bf16.msra.mxu1 %v945_v22 }
 0x2af   :  { %1062 = vmatprep.subr.bf16.mxu1 %v1265_v34 }
 0x2b2   :  { %1063 = vmatpush3.bf16.msra.mxu1 %v944_v39 }
 0x363   :  { %v1033_v20 = vpop.f32.mrf.mxu0 }
 0x365   :  { %v1034_v40 = vpop.f32.mrf.mxu0 }
 0x366   :  { %v1035_v12 = vadd.f32 %v1034_v40, %v1033_v20 }
 0x367   :  { %v1036_v41 = vpop.f32.mrf.mxu0 }
 0x368   :  { %v912_v13 = vrot.slane %v1035_v12, 4  ;;  %v919_v42 = vmul.f32 %v1035_v12, %v1035_v12 }
 0x369   :  { %v1037_v43 = vpop.f32.mrf.mxu0 }
 0x36a   :  { %v913_v44 = vadd.f32 %v1035_v12, %v912_v13  ;;  %v920_v23 = vrot.slane %v919_v42, 4 }
 0x36c   :  { %v914_v10 = vrot.slane %v913_v44, 2  ;;  %v921_v45 = vadd.f32 %v920_v23, %v919_v42 }
 0x36e   :  { %v915_v46 = vadd.f32 %v914_v10, %v913_v44  ;;  %v922_v47 = vrot.slane %v921_v45, 2 }
 0x370   :  { %v916_v48 = vrot.slane %v915_v46, 1  ;;  %v923_v49 = vadd.f32 %v922_v47, %v921_v45 }
 0x372   :  { %v917_v50 = vadd.f32 %v916_v48, %v915_v46  ;;  %v924_v51 = vrot.slane %v923_v49, 1 }
 0x374   :  { %v918_v52 = vmul.f32 0.125, %v917_v50  ;;  %v925_v18 = vadd.f32 %v924_v51, %v923_v49 }
 0x376   :  { %v926_v53 = vmul.f32 0.125, %v925_v18  ;;  %v927_v19 = vmul.f32 %v918_v52, %v918_v52 }
 0x378   :  { %v928_v55 = vsub.f32 %v926_v53, %v927_v19 }
 0x37a   :  { %v929_v56 = vmul.f32 %v928_v55, %v131_v54 }
 0x37c   :  { %v930_v57 = vadd.f32 1e-05, %v929_v56 }
 0x37e   :  { %1099 = vrsqrt.f32 %v930_v57 }
 0x38b   :  { %v1100_v59 = vpop.eup %1099 }
 0x38c   :  { %v932_v60 = vmul.f32 %v1100_v59, %v130_v58 }
 0x38e   :  { %v933_v62 = vmul.f32 %v932_v60, %v918_v52  ;;  %v935_v63 = vmul.f32 %v1035_v12, %v932_v60 }
 0x390   :  { %v934_v0 = vsub.f32 %v132_v61, %v933_v62 }
 0x392   :  { %v936_v8 = vadd.f32 %v935_v63, %v934_v0 }
 0x394   :  { %v937_v1 = vmul.f32 0.01, %v936_v8 }
 0x396   :  { %v938_v2 = vmax.f32 %v936_v8, %v937_v1 }
 0x398   :  { %v939_v5 = vpack.c.bf16 %v938_v2, %v938_v2 }
 0x39a   :  { %1065 = vmatmul.mubr.bf16.vlgmr.msra.gmra.mxu1 %v939_v5 }
 0x45a   :  { %v986_v15 = vpop.f32.mrf.mxu1 }
 0x45b   :  { %v992_v17 = vmul.f32 %v986_v15, %v133_v7 }
 0x45c   :  { %v1066_v24 = vpop.f32.mrf.mxu1 }
 0x45d   :  { %v993_v25 = vadd.f32 %v992_v17, %v134_v14 }
 0x45e   :  { %v989_v26 = vpop.f32.mrf.mxu1 }
 0x45f   :  { %994 = vst [vmem:[#allocation14] sm:$0xff] %v993_v25 }
 0x460   :  { %v1067_v27 = vpop.f32.mrf.mxu1 }
 0x461   :  { %1232 = shalt.err (!%p1229_p6)
}
 0x462   :  { %1004 = dma.vmem_to_hbm [thread:$0]  %s1002_s5, 128, %s1434_s6, [#allocation5]  }
 0x463   :  { %1249 = dma.done.wait [#allocation5], 128  }
 0x464   :  { %1250 = vsyncadd [#allocation5], 4294967168 }
 0x465   :  { %1008 = vsyncpa [#allocation4], 1 }
 0x466   :  { %1009 = vsyncpa [#allocation7], 1 }
 0x467   :  { %1010 = vsyncpa [#allocation10], 1 }
 0x468   :  { %1011 = vsyncpa [#allocation13], 1 }
 0x469   :  { %1012 = vsyncpa [#allocation5], 1 }

</bundles_post_ra>
